<compile_context>
chip_gen: v7x
topology: tpu7x:2x2x1
jax: 0.10.0
libtpu: 0.0.40
codegen_flags: <defaults>
</compile_context>

<pallas_src>
import functools

import numpy as np
import jax
import jax.numpy as jnp
from jax.experimental import pallas as pl
from jax.experimental.pallas import tpu as pltpu


# ---------------------------------------------------------------------------
# Kernel: one cell type, one batch block.
# ---------------------------------------------------------------------------
def _retina_type_kernel(z_ref, x_ref, o_ref, *, mxu_dtype):
    """z_ref: (bt, C, C) noisy logits (w + gumbel) / tau
       x_ref: (bt, C, F) activations of this cell type's neurons
       o_ref: (bt, C, F) output

    out[b, i, f] = sum_j softmax_dim1(z)[b, i, j] * x[b, j, f]
    (mirrors F.gumbel_softmax(w, dim=1) @ x of the reference module).
    """
    z = z_ref[...].astype(jnp.float32)

    # Softmax over dim=1: every column of the (C, C) mixing matrix sums to 1.
    m = jnp.max(z, axis=1, keepdims=True)
    e = jnp.exp(z - m)
    soft = e / jnp.sum(e, axis=1, keepdims=True)

    # MXU-native NN contraction, bf16 operands, f32 accumulation.
    x = x_ref[...]
    o = jnp.einsum(
        "bij,bjf->bif",
        soft.astype(mxu_dtype),
        x.astype(mxu_dtype),
        preferred_element_type=jnp.float32,
    )
    o_ref[...] = o.astype(o_ref.dtype)


# ---------------------------------------------------------------------------
# Per-type pallas_call wrapper (batch-blocked pipeline).
# ---------------------------------------------------------------------------
def _retina_type_call(z, x_slice, *, mxu_dtype=jnp.bfloat16,
                      vmem_budget_bytes=12 * 2**20,
                      vmem_limit_bytes=32 * 2**20):
    """z: (B, C, C) noisy logits, x_slice: (B, C, F) -> (B, C, F)."""
    B, C, _ = z.shape
    F = x_slice.shape[2]
    out_dtype = x_slice.dtype

    isz_z = jnp.dtype(z.dtype).itemsize
    isz_x = jnp.dtype(x_slice.dtype).itemsize
    isz_o = jnp.dtype(out_dtype).itemsize
    isz_m = jnp.dtype(mxu_dtype).itemsize

    # VMEM footprint per batch element:
    #   - double-buffered pipeline blocks for z / x / out,
    #   - f32 softmax intermediates (~3 copies of the z block),
    #   - f32 matmul result and bf16 matmul operand copies.
    per_b = (2 * (C * C * isz_z + C * F * isz_x + C * F * isz_o)
             + 3 * C * C * 4 + C * F * 4
             + (C * C + C * F) * isz_m)
    bt = max(1, min(B, vmem_budget_bytes // max(per_b, 1)))
    if B >= 2:
        bt = min(bt, (B + 1) // 2)   # >= 2 grid steps: megacore + DMA overlap
    bt = int(bt)

    n_blocks = (B + bt - 1) // bt
    Bp = n_blocks * bt
    if Bp != B:
        # Zero-padded tail block (softmax of all-zero logits is finite; padded
        # x rows are zero so the padded outputs are zero and sliced off).
        pad = ((0, Bp - B), (0, 0), (0, 0))
        z = jnp.pad(z, pad)
        x_slice = jnp.pad(x_slice, pad)

    kernel = functools.partial(_retina_type_kernel, mxu_dtype=mxu_dtype)
    out = pl.pallas_call(
        kernel,
        out_shape=jax.ShapeDtypeStruct((Bp, C, F), out_dtype),
        grid=(n_blocks,),
        in_specs=[
            pl.BlockSpec((bt, C, C), lambda b: (b, 0, 0)),
            pl.BlockSpec((bt, C, F), lambda b: (b, 0, 0)),
        ],
        out_specs=pl.BlockSpec((bt, C, F), lambda b: (b, 0, 0)),
        compiler_params=pltpu.CompilerParams(
            dimension_semantics=("parallel",),
            vmem_limit_bytes=vmem_limit_bytes,
        ),
    )(z, x_slice)
    return out[:B] if Bp != B else out


# ---------------------------------------------------------------------------
# Module helpers (mirror the PyTorch module).
# ---------------------------------------------------------------------------
def get_neuron_counts(cell_type_indices):
    """dict {type_index: count}, sorted by type index (value_counts + sort)."""
    cti = np.asarray(cell_type_indices)
    types, counts = np.unique(cti, return_counts=True)
    return {int(t): int(c) for t, c in zip(types, counts)}


def init_weights(cell_type_indices, batch_size, key, dtype=jnp.float32):
    """One (batch_size, count, count) weight tensor per cell type."""
    counts = get_neuron_counts(cell_type_indices)
    weights = []
    for count in counts.values():
        key, sub = jax.random.split(key)
        weights.append(jax.random.normal(sub, (batch_size, count, count), dtype=dtype))
    return weights


def _noisy_logits(w, key, tau):
    """(w + Gumbel(0,1)) / tau  — the perturbed logits of F.gumbel_softmax."""
    g = jax.random.gumbel(key, w.shape, dtype=jnp.float32)
    return (w.astype(jnp.float32) + g) * (1.0 / tau)


def _per_type_plan(cell_type_indices):
    cti = np.asarray(cell_type_indices)
    types, counts = np.unique(cti, return_counts=True)
    N = cti.shape[0]
    perm = np.concatenate([np.nonzero(cti == t)[0] for t in types]).astype(np.int32)
    identity = bool(np.array_equal(perm, np.arange(N)))
    inv_perm = np.argsort(perm).astype(np.int32)
    return types, counts, perm, inv_perm, identity


# ---------------------------------------------------------------------------
# Forward pass (Pallas) and pure-JAX reference.
# ---------------------------------------------------------------------------
def retina_connection_forward(x, weights, cell_type_indices, batch_size,
                              num_features, key, tau=1.0):
    """Replicates DEPRECATED_RetinaConnectionLayer.forward.

    x : reshapeable to (batch_size, N, num_features)
    returns : (batch_size * N, num_features)
    """
    types, counts, perm, inv_perm, identity = _per_type_plan(cell_type_indices)
    x = jnp.asarray(x).reshape(batch_size, -1, num_features)

    # Static pre-sort of neurons by cell type -> contiguous per-type slices;
    # x keeps its natural (B, N, F) layout (no wrapper transposes).
    x_sorted = x if identity else x[:, perm, :]

    keys = jax.random.split(key, len(types))
    outs, off = [], 0
    for pos, (t, c) in enumerate(zip(types, counts)):
        c = int(c)
        # Mirrors the module (ParameterList indexed by type value; the module
        # itself only works when type ids are exactly 0..T-1).
        w = weights[int(t)]
        z = _noisy_logits(w, keys[pos], tau)
        outs.append(_retina_type_call(z, x_sorted[:, off:off + c, :]))
        off += c

    # TODO(synk): single fused pallas_call over all cell types (scalar-prefetched
    # offsets / padded C, small-type packing) would remove per-type launches and
    # this concatenate.
    out_sorted = jnp.concatenate(outs, axis=1) if len(outs) > 1 else outs[0]
    out = out_sorted if identity else out_sorted[:, inv_perm, :]
    return out.reshape(-1, num_features)


def retina_connection_reference(x, weights, cell_type_indices, batch_size,
                                num_features, key, tau=1.0):
    """Pure-JAX reference using the *same* noisy logits (same keys)."""
    types, counts, perm, inv_perm, identity = _per_type_plan(cell_type_indices)
    x = jnp.asarray(x).reshape(batch_size, -1, num_features)
    x_sorted = x if identity else x[:, perm, :]
    keys = jax.random.split(key, len(types))
    outs, off = [], 0
    for pos, (t, c) in enumerate(zip(types, counts)):
        c = int(c)
        z = _noisy_logits(weights[int(t)], keys[pos], tau)
        soft = jax.nn.softmax(z, axis=1)
        outs.append(jnp.einsum("bij,bjf->bif", soft, x_sorted[:, off:off + c, :]))
        off += c
    out_sorted = jnp.concatenate(outs, axis=1) if len(outs) > 1 else outs[0]
    out = out_sorted if identity else out_sorted[:, inv_perm, :]
    return out.reshape(-1, num_features)


# ---------------------------------------------------------------------------
# Demo / self-test.
# ---------------------------------------------------------------------------
if __name__ == "__main__":
    # 2 batches, 16 neurons (10 of type 0, 6 of type 1, interleaved to
    # exercise the permutation path), 1 feature (module default).
    batch_size = 2
    num_features = 1
    cell_type_indices = np.array(
        [0, 1, 0, 0, 1, 0, 1, 0, 0, 1, 0, 0, 1, 0, 0, 1], dtype=np.int32)
    N = cell_type_indices.shape[0]

    root = jax.random.PRNGKey(0)
    wkey, xkey, nkey = jax.random.split(root, 3)

    weights = init_weights(cell_type_indices, batch_size, wkey, dtype=jnp.float32)
    x = jax.random.normal(xkey, (batch_size, N, num_features), dtype=jnp.float32)

    out = retina_connection_forward(
        x, weights, cell_type_indices, batch_size, num_features, nkey, tau=1.0)
    out = jax.block_until_ready(out)

    assert out.shape == (batch_size * N, num_features), out.shape
    assert bool(jnp.all(jnp.isfinite(out)))

    # Strong check: pure-JAX reference with identical noise (only bf16-MXU
    # rounding differs).
    ref = retina_connection_reference(
        x, weights, cell_type_indices, batch_size, num_features, nkey, tau=1.0)
    np.testing.assert_allclose(np.asarray(out), np.asarray(ref),
                               rtol=5e-2, atol=5e-2)

    # Invariant: softmax over dim=1 makes every column of the mixing matrix sum
    # to ~1, so per-type, per-batch output sums match the input sums.
    out_bnf = np.asarray(out).reshape(batch_size, N, num_features)
    x_np = np.asarray(x)
    for t in np.unique(cell_type_indices):
        idx = np.nonzero(cell_type_indices == t)[0]
        got = out_bnf[:, idx, :].sum(axis=1)
        want = x_np[:, idx, :].sum(axis=1)
        assert np.allclose(got, want, rtol=1e-1, atol=1e-1), (int(t), got, want)

    print("KERNEL_OK")
</pallas_src>

<mosaic_0001>
module attributes {stable_mosaic.version = 11 : i64} {
  func.func @_retina_type_kernel(%arg0: i32, %arg1: memref<1x10x10xf32, #tpu.memory_space<vmem>>, %arg2: memref<1x10x1xf32, #tpu.memory_space<vmem>>, %arg3: memref<1x10x1xf32, #tpu.memory_space<vmem>>) attributes {dimension_semantics = [#tpu.dimension_semantics<parallel>], iteration_bounds = array<i64: 2>, scalar_prefetch = 0 : i64, scratch_operands = 0 : i64, tpu.core_type = #tpu.core_type<tc>, window_params = [{transform_indices = @transform_0, window_bounds = array<i64: 1, 10, 10>}, {transform_indices = @transform_1, window_bounds = array<i64: 1, 10, 1>}, {transform_indices = @transform_2, window_bounds = array<i64: 1, 10, 1>}]} {
    %c0 = arith.constant 0 : index
    %c0_0 = arith.constant 0 : index
    %c0_1 = arith.constant 0 : index
    %0 = vector.load %arg1[%c0, %c0_0, %c0_1] : memref<1x10x10xf32, #tpu.memory_space<vmem>>, vector<1x10x10xf32>
    %cst = arith.constant dense<0xFF800000> : vector<1x10xf32>
    %1 = vector.multi_reduction <maximumf>, %0, %cst [1] : vector<1x10x10xf32> to vector<1x10xf32>
    %2 = vector.shape_cast %1 : vector<1x10xf32> to vector<1x1x10xf32>
    %3 = vector.broadcast %2 : vector<1x1x10xf32> to vector<1x10x10xf32>
    %4 = arith.subf %0, %3 : vector<1x10x10xf32>
    %5 = math.exp %4 : vector<1x10x10xf32>
    %cst_2 = arith.constant dense<0.000000e+00> : vector<1x10xf32>
    %6 = vector.multi_reduction <add>, %5, %cst_2 [1] : vector<1x10x10xf32> to vector<1x10xf32>
    %7 = vector.shape_cast %6 : vector<1x10xf32> to vector<1x1x10xf32>
    %8 = vector.broadcast %7 : vector<1x1x10xf32> to vector<1x10x10xf32>
    %9 = arith.divf %5, %8 : vector<1x10x10xf32>
    %c0_3 = arith.constant 0 : index
    %c0_4 = arith.constant 0 : index
    %c0_5 = arith.constant 0 : index
    %10 = vector.load %arg2[%c0_3, %c0_4, %c0_5] : memref<1x10x1xf32, #tpu.memory_space<vmem>>, vector<1x10x1xf32>
    %11 = arith.truncf %9 : vector<1x10x10xf32> to vector<1x10x10xbf16>
    %12 = arith.truncf %10 : vector<1x10x1xf32> to vector<1x10x1xbf16>
    "tpu.trace_start"() <{level = 10 : i32, message = "bij,bjf->bif"}> : () -> ()
    %cst_6 = arith.constant dense<0.000000e+00> : vector<1x10x1xf32>
    %13 = tpu.matmul %11, %12, %cst_6 {dimension_numbers = #tpu.dot_dimension_numbers<[2], [1], [1], [2], [0, 0, 0, 1, 1, 2], [0], [0]>} : vector<1x10x10xbf16>, vector<1x10x1xbf16>, vector<1x10x1xf32> -> vector<1x10x1xf32>
    "tpu.trace_stop"() : () -> ()
    %c0_7 = arith.constant 0 : index
    %c0_8 = arith.constant 0 : index
    %c0_9 = arith.constant 0 : index
    %14 = vector.load %arg3[%c0_7, %c0_8, %c0_9] : memref<1x10x1xf32, #tpu.memory_space<vmem>>, vector<1x10x1xf32>
    tpu.vector_store %arg3[%c0_7, %c0_8, %c0_9], %13 {strides = array<i32>} : memref<1x10x1xf32, #tpu.memory_space<vmem>>, vector<1x10x1xf32>,
    return
  }
  func.func @transform_0(%arg0: i32) -> (i32, i32, i32) {
    %c0_i32 = arith.constant 0 : i32
    %c0_i32_0 = arith.constant 0 : i32
    %c0_i32_1 = arith.constant 0 : i32
    return %arg0, %c0_i32, %c0_i32_0 : i32, i32, i32
  }
  func.func @transform_1(%arg0: i32) -> (i32, i32, i32) {
    %c0_i32 = arith.constant 0 : i32
    %c0_i32_0 = arith.constant 0 : i32
    %c0_i32_1 = arith.constant 0 : i32
    return %arg0, %c0_i32, %c0_i32_0 : i32, i32, i32
  }
  func.func @transform_2(%arg0: i32) -> (i32, i32, i32) {
    %c0_i32 = arith.constant 0 : i32
    %c0_i32_0 = arith.constant 0 : i32
    %c0_i32_1 = arith.constant 0 : i32
    return %arg0, %c0_i32, %c0_i32_0 : i32, i32, i32
  }
}

</mosaic_0001>

<bundles_post_ra>
// kernel: tpu_custom_call.1
= control target key start
LH: loop header
LB: loop body
LE: loop exit
PB: predicated region body
PF: predicated region fallthrough
CT: control target
= control target key end

     0   :  { %s385_s9 = smov 0   ;;  %s415_s0 = inlined_call_operand.vmem [shape: f32[2,10,10], index: 0, kind: input, shape index: {}]   ;;  %s416_s1 = inlined_call_operand.vmem [shape: f32[2,10,1], index: 1, kind: input, shape index: {}]   ;;  %s417_s2 = inlined_call_operand.vmem [shape: f32[2,10,1], index: 2, kind: output, shape index: {}]  }
   0x1 LB: > { %s319_s10 = sadd.s32 4294967295, %s366_s9   ;;  %p323_p0 = scmp.ge.s32.totalorder %s366_s9, 1  ;;  %s366_s9 = sphi %s385_s9, %s12_s9  }
   0x2   : > { %p122_p1 = scmp.lt.s32.totalorder %s366_s9, 3 }
   0x4   : > { %p123_p2 = pnand %p323_p0, %p122_p1 }
   0x5   : > { %p149_p3 = scmp.lt.s32.totalorder (!%p123_p2), %s319_s10, 1  ;;  %v368_v0 = vmov (!%p123_p2), 0.0   ;;  %vm369_vm0 = vmmov (!%p123_p2), 0   ;;  %vm167_vm1 = vcmask (!%p123_p2), 80896   ;;  %vm169_vm2 = vcmask (!%p123_p2), 74752  }
   0x6   : > { %126 = sbr.rel (%p123_p2) target bundleno = 294 (0x126), region = 28  ;;  %338 = vmatprep.subr.bf16.mxu0 (!%p123_p2), %v368_v0  ;;  %340 = vmatprep.mubr.msk.bf16.mxu0 (!%p123_p2), %vm369_vm0, %v368_v0  ;;  %vm203_vm3 = vcmask (!%p123_p2), 1044480   ;;  %vm248_vm4 = vcmask (!%p123_p2), 7168   ;;  %vm250_vm5 = vcmask (!%p123_p2), 1024  }
   0xd   : > { %s419_s10 = smov (!%p149_p3, %s319_s10), 1 }
   0xe   : > { %s393_s11 = sshll.u32 %s419_s10, 4 }
   0xf   : > { %s158_s14 = scalar_lea.vmem %s416_s1, %s393_s11  ;;  %s153_s17 = scalar_lea.vmem %s415_s0, %s393_s11 }
  0x10   : > { %v196_v1 = vld [vmem:[%s158_s14] sm:$0xff]  ;;  %v197_v2 = vld [vmem:[%s158_s14 + $0x8] sm:$0x3]  ;;  %s163_s20 = scalar_lea.vmem %s417_s2, %s393_s11 }
  0x11   : > { %v165_v3 = vld [vmem:[%s153_s17] sm:$0xff]  ;;  %v199_v4 = vpack.c.bf16 %v197_v2, %v196_v1  ;;  %v166_v5 = vld [vmem:[%s153_s17 + $0x8] sm:$0x3] }
  0x12   : > { %v168_v6 = vsel %vm167_vm1, %v165_v3, -inf  ;;  %v170_v7 = vsel %vm169_vm2, %v166_v5, -inf }
  0x13   : > { %v205_v8 = vsel %vm203_vm3, %v199_v4, 0  ;;  %v171_v9 = vmax.f32 %v168_v6, %v170_v7 }
  0x14   : > { %339 = vmatpush3.bf16.msra.mxu0 %v205_v8 }
  0x15   : > { %v172_v10 = vrot.slane %v171_v9, 4 }
  0x17   : > { %v173_v11 = vmax.f32 %v171_v9, %v172_v10 }
  0x19   : > { %v174_v12 = vrot.slane %v173_v11, 2 }
  0x1b   : > { %v175_v13 = vmax.f32 %v173_v11, %v174_v12 }
  0x1d   : > { %v176_v14 = vrot.slane %v175_v13, 1 }
  0x1f   : > { %v177_v15 = vmax.f32 %v175_v13, %v176_v14 }
  0x21   : > { %v178_v16 = vsub.f32 %v165_v3, %v177_v15  ;;  %v179_v17 = vsub.f32 %v166_v5, %v177_v15 }
  0x23   : > { %v180_v18 = vmul.f32 1.442695, %v178_v16  ;;  %v182_v19 = vmul.f32 1.442695, %v179_v17 }
  0x25   : > { %354 = vpow2.f32 %v180_v18 }
  0x26   : > { %356 = vpow2.f32 %v182_v19 }
  0x2f   : > { %v355_v20 = vpop.eup %354 }
  0x30   : > { %v357_v21 = vpop.eup %356  ;;  %v184_v22 = vsel %vm167_vm1, %v355_v20, 0.0 }
  0x31   : > { %v185_v23 = vsel %vm169_vm2, %v357_v21, 0.0 }
  0x32   : > { %v186_v24 = vadd.f32 %v185_v23, %v184_v22 }
  0x34   : > { %v187_v25 = vrot.slane %v186_v24, 4 }
  0x36   : > { %v188_v26 = vadd.f32 %v187_v25, %v186_v24 }
  0x38   : > { %v189_v27 = vrot.slane %v188_v26, 2 }
  0x3a   : > { %v190_v28 = vadd.f32 %v189_v27, %v188_v26 }
  0x3c   : > { %v191_v29 = vrot.slane %v190_v28, 1 }
  0x3e   : > { %v192_v30 = vadd.f32 %v191_v29, %v190_v28 }
  0x40   : > { %358 = vrcp.f32 %v192_v30 }
  0x4a   : > { %v359_v31 = vpop.eup %358 }
  0x4b   : > { %v194_v32 = vmul.f32 %v359_v31, %v355_v20  ;;  %v195_v33 = vmul.f32 %v359_v31, %v357_v21 }
  0x4d   : > { %v198_v34 = vpack.c.bf16 %v195_v33, %v194_v32 }
  0x4f   : > { %341 = vmatmul.mubr.msk.bf16.vlgmr.msra.gmra.mrb[0].mxu0 %vm167_vm1, %v198_v34 }
 0x122   : > { %v241_v35 = vpop.f32.mrb[0].mxu0 }
 0x123   : > { %249 = vst.msk [vmem:[%s163_s20] sm:$0xff] %vm248_vm4, %v241_v35  ;;  %v342_v36 = vpop.f32.mrb[1].mxu0 }
 0x124   : > { %v244_v37 = vpop.f32.mrb[2].mxu0 }
 0x125   : > { %251 = vst.msk [vmem:[%s163_s20 + $0x8] sm:$0x3] %vm250_vm5, %v244_v37  ;;  %v343_v38 = vpop.f32.mrb[3].mxu0 }
 0x126 PF: > { %s12_s9 = sadd.s32 1, %s366_s9  }
 0x127   : > { %p9_p4 = scmp.ge.s32.totalorder %s12_s9, 4  }
 0x129   :  { %11 = sbr.rel (!%p9_p4) target bundleno = 1 (0x1), region = 61 }

</bundles_post_ra>
